<compile_context>
chip_gen: v5e
topology: v5e:2x2
jax: 0.10.0
libtpu: 0.0.40
codegen_flags: <defaults>
</compile_context>

<pallas_src>
import math
from functools import partial

import jax
import jax.numpy as jnp
from jax.experimental import pallas as pl
from jax.experimental.pallas import tpu as pltpu


def _round_up(x, m):
    return ((x + m - 1) // m) * m


# --------------------------- fused UNet-lite kernel -------------------------

def _fused_unet_kernel(
    a_ref, s_ref,                  # SMEM (B,) q-sample scalars
    x_ref, n_ref,                  # (1, Cp, HW) lane-dense NCHW blocks
    tp_ref,                        # (1, NB, ch) per-batch time projections
    w_in_ref, b_in_ref,            # (9, Cp, ch) bf16 / (1, ch) f32
    bw1_ref, bb1_ref,              # (NB, 9, ch, ch) bf16 / (NB, 1, ch) f32
    bw2_ref, bb2_ref,              # (NB, 9, ch, ch) bf16 / (NB, 1, ch) f32
    w_out_ref, b_out_ref,          # (9, ch, Cp) bf16 / (1, Cp) f32
    o_ref,                         # (1, Cp, HW) x_recon out (lane-dense)
    sq_ref,                        # (1, 8, 128) per-batch sum of squared error
    pad_x, pad_h,                  # VMEM scratch: zero-padded spatial tiles
    *, H, W, Cp, ch, NB, PW,
):
    HW = H * W
    b = pl.program_id(0)

    def conv3x3(pad_ref, get_w, bias, cin, cout):
        """3x3 / stride 1 / pad 1 conv as 9 accumulated GEMM taps (bf16 MXU,
        f32 accumulation) read from a zero-padded VMEM tile."""
        xp = pad_ref[...]                                   # (H+2, W+2*PW, cin)
        acc = jnp.zeros((HW, cout), jnp.float32)
        for t in range(9):
            di, dj = divmod(t, 3)
            a = xp[di:di + H, PW - 1 + dj:PW - 1 + dj + W, :]
            a = a.reshape(HW, cin).astype(jnp.bfloat16)
            acc = acc + jnp.dot(a, get_w(t),
                                preferred_element_type=jnp.float32)
        return acc + bias

    # zero padded-scratch borders; interiors are fully rewritten below
    pad_x[...] = jnp.zeros(pad_x.shape, pad_x.dtype)
    pad_h[...] = jnp.zeros(pad_h.shape, pad_h.dtype)

    # --- fused q_sample: x_t = sqrt_ac[t_b]*x + sqrt_1m_ac[t_b]*noise -------
    noise = n_ref[0]                                        # (Cp, HW) f32
    x_noisy = a_ref[b] * x_ref[0] + s_ref[b] * noise        # (Cp, HW) f32

    # channels-last spatial form for the conv taps (small in-VMEM transpose)
    pad_x[1:H + 1, PW:PW + W, :] = x_noisy.T.reshape(H, W, Cp)

    # --- input conv ----------------------------------------------------------
    h = conv3x3(pad_x, lambda t: w_in_ref[t], b_in_ref[...], Cp, ch)

    # --- residual blocks: conv -> +time -> SiLU -> conv -> +residual ---------
    for i in range(NB):
        pad_h[1:H + 1, PW:PW + W, :] = h.reshape(H, W, ch)
        h1 = conv3x3(pad_h, lambda t: bw1_ref[i, t], bb1_ref[i], ch, ch)
        h1 = h1 + tp_ref[0, i][None, :]                     # time conditioning
        h1 = h1 * jax.nn.sigmoid(h1)                        # SiLU (f32)
        pad_h[1:H + 1, PW:PW + W, :] = h1.reshape(H, W, ch)
        h2 = conv3x3(pad_h, lambda t: bw2_ref[i, t], bb2_ref[i], ch, ch)
        h = h + h2                                          # residual

    # --- output conv ----------------------------------------------------------
    pad_h[1:H + 1, PW:PW + W, :] = h.reshape(H, W, ch)
    out = conv3x3(pad_h, lambda t: w_out_ref[t], b_out_ref[...], ch, Cp)

    rec = out.T                                             # (Cp, HW) lane-dense
    o_ref[0] = rec

    # --- fused MSE partial sum (padded channels are identically zero) --------
    d = rec - noise
    sq_ref[0] = jnp.zeros((8, 128), jnp.float32) + jnp.sum(d * d)


def fused_unet_forward(x2, n2, a, s, tproj, p, *, H, W, ch, NB):
    B, Cp, HW = x2.shape
    PW = 8   # interior starts at a sublane-aligned offset in the padded tile
    kernel = partial(_fused_unet_kernel, H=H, W=W, Cp=Cp, ch=ch, NB=NB, PW=PW)
    vmem = pltpu.MemorySpace.VMEM
    smem = pltpu.MemorySpace.SMEM

    def full():
        return pl.BlockSpec(memory_space=vmem)

    rec, sq = pl.pallas_call(
        kernel,
        grid=(B,),
        in_specs=[
            pl.BlockSpec(memory_space=smem),                     # a
            pl.BlockSpec(memory_space=smem),                     # s
            pl.BlockSpec((1, Cp, HW), lambda b: (b, 0, 0)),      # x
            pl.BlockSpec((1, Cp, HW), lambda b: (b, 0, 0)),      # noise
            pl.BlockSpec((1, NB, ch), lambda b: (b, 0, 0)),      # tproj
            full(), full(),                                      # w_in, b_in
            full(), full(),                                      # bw1,  bb1
            full(), full(),                                      # bw2,  bb2
            full(), full(),                                      # w_out, b_out
        ],
        out_specs=(
            pl.BlockSpec((1, Cp, HW), lambda b: (b, 0, 0)),
            pl.BlockSpec((1, 8, 128), lambda b: (b, 0, 0)),
        ),
        out_shape=(
            jax.ShapeDtypeStruct((B, Cp, HW), jnp.float32),
            jax.ShapeDtypeStruct((B, 8, 128), jnp.float32),
        ),
        scratch_shapes=[
            pltpu.VMEM((H + 2, W + 2 * PW, Cp), jnp.float32),
            pltpu.VMEM((H + 2, W + 2 * PW, ch), jnp.float32),
        ],
        compiler_params=pltpu.CompilerParams(
            dimension_semantics=("parallel",)),   # shards over 2 TCs on v7x
    )(a, s, x2, n2, tproj,
      p["w_in"], p["b_in"], p["bw1"], p["bb1"], p["bw2"], p["bb2"],
      p["w_out"], p["b_out"])
    return rec, sq[:, 0, 0]


# ------------------------- fused time-MLP kernel ----------------------------

def _time_mlp_kernel(e_ref, w1_ref, b1_ref, w2_ref, b2_ref, wp_ref, bp_ref,
                     o_ref):
    h = jnp.dot(e_ref[...].astype(jnp.bfloat16), w1_ref[...],
                preferred_element_type=jnp.float32) + b1_ref[...]
    h = h * jax.nn.sigmoid(h)                               # SiLU (f32)
    h = jnp.dot(h.astype(jnp.bfloat16), w2_ref[...],
                preferred_element_type=jnp.float32) + b2_ref[...]
    # all res-block time projections in one matmul (N = n_blocks * ch)
    o_ref[...] = jnp.dot(h.astype(jnp.bfloat16), wp_ref[...],
                         preferred_element_type=jnp.float32) + bp_ref[...]


def time_mlp(temb0, p, *, NB, ch):
    B = temb0.shape[0]
    vmem = pltpu.MemorySpace.VMEM
    out = pl.pallas_call(
        _time_mlp_kernel,
        in_specs=[pl.BlockSpec(memory_space=vmem)] * 7,
        out_specs=pl.BlockSpec(memory_space=vmem),
        out_shape=jax.ShapeDtypeStruct((B, NB * ch), jnp.float32),
    )(temb0, p["t_w1"], p["t_b1"], p["t_w2"], p["t_b2"],
      p["tw_all"], p["tb_all"])
    return out.reshape(B, NB, ch)


# ------------------------------ JAX glue ------------------------------------

def time_embedding(t, dim):
    half = dim // 2
    freqs = jnp.exp(-math.log(10000.0) *
                    jnp.arange(half, dtype=jnp.float32) / half)
    args = t.astype(jnp.float32)[:, None] * freqs[None, :]
    return jnp.concatenate([jnp.sin(args), jnp.cos(args)], axis=-1)


def make_beta_schedule(schedule, n_timestep, linear_start=1e-4, linear_end=2e-2):
    assert schedule == "linear"
    betas = jnp.linspace(linear_start ** 0.5, linear_end ** 0.5,
                         n_timestep, dtype=jnp.float32) ** 2
    alphas = 1.0 - betas
    ac = jnp.cumprod(alphas)
    return {
        "sqrt_alphas_cumprod": jnp.sqrt(ac),
        "sqrt_one_minus_alphas_cumprod": jnp.sqrt(1.0 - ac),
    }


def init_params(key, in_ch, ch, n_res_blocks):
    td = ch * 4
    NB = n_res_blocks
    Cp = max(8, _round_up(in_ch, 8))
    keys = jax.random.split(key, 7)

    def w(k, shape):
        return 0.02 * jax.random.normal(keys[k], shape, jnp.float32)

    w_in = jnp.pad(w(3, (9, in_ch, ch)), ((0, 0), (0, Cp - in_ch), (0, 0)))
    w_out = jnp.pad(w(6, (9, ch, in_ch)), ((0, 0), (0, 0), (0, Cp - in_ch)))

    bf = jnp.bfloat16
    return {
        "t_w1": w(0, (ch, td)).astype(bf),
        "t_b1": jnp.zeros((1, td), jnp.float32),
        "t_w2": w(1, (td, td)).astype(bf),
        "t_b2": jnp.zeros((1, td), jnp.float32),
        "tw_all": w(2, (td, NB * ch)).astype(bf),
        "tb_all": jnp.zeros((1, NB * ch), jnp.float32),
        "w_in": w_in.astype(bf),  "b_in": jnp.zeros((1, ch), jnp.float32),
        "bw1": w(4, (NB, 9, ch, ch)).astype(bf),
        "bb1": jnp.zeros((NB, 1, ch), jnp.float32),
        "bw2": w(5, (NB, 9, ch, ch)).astype(bf),
        "bb2": jnp.zeros((NB, 1, ch), jnp.float32),
        "w_out": w_out.astype(bf), "b_out": jnp.zeros((1, Cp), jnp.float32),
    }


def residual_aligner_forward(params, sched, x_nchw, n_timestep, ch,
                             n_res_blocks, key_t, key_n):
    B, Cin, H, W = x_nchw.shape
    HW = H * W
    Cp = max(8, _round_up(Cin, 8))

    # torch.randint / torch.randn_like stand-ins (deterministic PRNGKey)
    t = jax.random.randint(key_t, (B,), 0, n_timestep)
    noise = jax.random.normal(key_n, x_nchw.shape, jnp.float32)

    a = sched["sqrt_alphas_cumprod"][t].astype(jnp.float32)
    s = sched["sqrt_one_minus_alphas_cumprod"][t].astype(jnp.float32)

    temb0 = time_embedding(t, ch)
    tproj = time_mlp(temb0, params, NB=n_res_blocks, ch=ch)       # (B, NB, ch)

    # lane-dense (B, C, H*W) slabs; channels zero-padded to a multiple of 8
    pad_c = ((0, 0), (0, Cp - Cin), (0, 0))
    x2 = jnp.pad(x_nchw.reshape(B, Cin, HW), pad_c)
    n2 = jnp.pad(noise.reshape(B, Cin, HW), pad_c)

    rec2, sqerr = fused_unet_forward(x2, n2, a, s, tproj, params,
                                     H=H, W=W, ch=ch, NB=n_res_blocks)

    loss = jnp.sum(sqerr) / float(B * Cin * HW)          # padded chans are 0
    x_recon = rec2[:, :Cin, :].reshape(B, Cin, H, W)     # NCHW, like torch
    return loss, x_recon


# --------------------------------- main --------------------------------------

if __name__ == "__main__":
    B, in_ch, H, W = 2, 4, 16, 16
    ch, n_res_blocks, n_timestep = 32, 2, 100

    key = jax.random.PRNGKey(0)
    kx, kt, kn, kp = jax.random.split(key, 4)

    x_nchw = jax.random.normal(kx, (B, in_ch, H, W), jnp.float32)
    params = init_params(kp, in_ch, ch, n_res_blocks)
    sched = make_beta_schedule("linear", n_timestep)

    loss, x_recon = residual_aligner_forward(
        params, sched, x_nchw, n_timestep, ch, n_res_blocks, kt, kn)
    jax.block_until_ready((loss, x_recon))

    assert x_recon.shape == (B, in_ch, H, W)
    assert loss.shape == ()
    print("KERNEL_OK")
</pallas_src>

<mosaic_0001>
module attributes {stable_mosaic.version = 11 : i64} {
  func.func @_time_mlp_kernel(%arg0: memref<2x32xf32, #tpu.memory_space<vmem>>, %arg1: memref<32x128xbf16, #tpu.memory_space<vmem>>, %arg2: memref<1x128xf32, #tpu.memory_space<vmem>>, %arg3: memref<128x128xbf16, #tpu.memory_space<vmem>>, %arg4: memref<1x128xf32, #tpu.memory_space<vmem>>, %arg5: memref<128x64xbf16, #tpu.memory_space<vmem>>, %arg6: memref<1x64xf32, #tpu.memory_space<vmem>>, %arg7: memref<2x64xf32, #tpu.memory_space<vmem>>) attributes {dimension_semantics = [], scalar_prefetch = 0 : i64, scratch_operands = 0 : i64, tpu.core_type = #tpu.core_type<tc>} {
    %c0 = arith.constant 0 : index
    %c0_0 = arith.constant 0 : index
    %0 = vector.load %arg0[%c0, %c0_0] : memref<2x32xf32, #tpu.memory_space<vmem>>, vector<2x32xf32>
    %1 = arith.truncf %0 : vector<2x32xf32> to vector<2x32xbf16>
    %c0_1 = arith.constant 0 : index
    %c0_2 = arith.constant 0 : index
    %2 = vector.load %arg1[%c0_1, %c0_2] : memref<32x128xbf16, #tpu.memory_space<vmem>>, vector<32x128xbf16>
    %cst = arith.constant dense<0.000000e+00> : vector<2x128xf32>
    %3 = tpu.matmul %1, %2, %cst {dimension_numbers = #tpu.dot_dimension_numbers<[1], [0], [0], [1], [0, 0, 1, 1], [], []>} : vector<2x32xbf16>, vector<32x128xbf16>, vector<2x128xf32> -> vector<2x128xf32>
    %c0_3 = arith.constant 0 : index
    %c0_4 = arith.constant 0 : index
    %4 = vector.load %arg2[%c0_3, %c0_4] : memref<1x128xf32, #tpu.memory_space<vmem>>, vector<1x128xf32>
    %5 = vector.broadcast %4 : vector<1x128xf32> to vector<2x128xf32>
    %6 = arith.addf %3, %5 : vector<2x128xf32>
    %7 = arith.negf %6 : vector<2x128xf32>
    %8 = math.exp %7 : vector<2x128xf32>
    %cst_5 = arith.constant 1.000000e+00 : f32
    %9 = vector.broadcast %cst_5 : f32 to vector<2x128xf32>
    %10 = arith.addf %9, %8 : vector<2x128xf32>
    %11 = arith.divf %9, %10 : vector<2x128xf32>
    %12 = arith.mulf %6, %11 : vector<2x128xf32>
    %13 = arith.truncf %12 : vector<2x128xf32> to vector<2x128xbf16>
    %c0_6 = arith.constant 0 : index
    %c0_7 = arith.constant 0 : index
    %14 = vector.load %arg3[%c0_6, %c0_7] : memref<128x128xbf16, #tpu.memory_space<vmem>>, vector<128x128xbf16>
    %cst_8 = arith.constant dense<0.000000e+00> : vector<2x128xf32>
    %15 = tpu.matmul %13, %14, %cst_8 {dimension_numbers = #tpu.dot_dimension_numbers<[1], [0], [0], [1], [0, 0, 1, 1], [], []>} : vector<2x128xbf16>, vector<128x128xbf16>, vector<2x128xf32> -> vector<2x128xf32>
    %c0_9 = arith.constant 0 : index
    %c0_10 = arith.constant 0 : index
    %16 = vector.load %arg4[%c0_9, %c0_10] : memref<1x128xf32, #tpu.memory_space<vmem>>, vector<1x128xf32>
    %17 = vector.broadcast %16 : vector<1x128xf32> to vector<2x128xf32>
    %18 = arith.addf %15, %17 : vector<2x128xf32>
    %19 = arith.truncf %18 : vector<2x128xf32> to vector<2x128xbf16>
    %c0_11 = arith.constant 0 : index
    %c0_12 = arith.constant 0 : index
    %20 = vector.load %arg5[%c0_11, %c0_12] : memref<128x64xbf16, #tpu.memory_space<vmem>>, vector<128x64xbf16>
    %cst_13 = arith.constant dense<0.000000e+00> : vector<2x64xf32>
    %21 = tpu.matmul %19, %20, %cst_13 {dimension_numbers = #tpu.dot_dimension_numbers<[1], [0], [0], [1], [0, 0, 1, 1], [], []>} : vector<2x128xbf16>, vector<128x64xbf16>, vector<2x64xf32> -> vector<2x64xf32>
    %c0_14 = arith.constant 0 : index
    %c0_15 = arith.constant 0 : index
    %22 = vector.load %arg6[%c0_14, %c0_15] : memref<1x64xf32, #tpu.memory_space<vmem>>, vector<1x64xf32>
    %23 = vector.broadcast %22 : vector<1x64xf32> to vector<2x64xf32>
    %24 = arith.addf %21, %23 : vector<2x64xf32>
    %c0_16 = arith.constant 0 : index
    %c0_17 = arith.constant 0 : index
    %25 = vector.load %arg7[%c0_16, %c0_17] : memref<2x64xf32, #tpu.memory_space<vmem>>, vector<2x64xf32>
    tpu.vector_store %arg7[%c0_16, %c0_17], %24 {strides = array<i32>} : memref<2x64xf32, #tpu.memory_space<vmem>>, vector<2x64xf32>,
    return
  }
}

</mosaic_0001>

<bundles_post_ra>
// kernel: tpu_custom_call.1
= control target key start
LH: loop header
LB: loop body
LE: loop exit
PB: predicated region body
PF: predicated region fallthrough
CT: control target
= control target key end

     0   :  { %s505_s0 = inlined_call_operand.vmem [shape: f32[2,32], index: 0, kind: input, shape index: {}]   ;;  %s506_s1 = inlined_call_operand.vmem [shape: bf16[32,128], index: 1, kind: input, shape index: {}]   ;;  %s507_s2 = inlined_call_operand.vmem [shape: f32[1,128], index: 2, kind: input, shape index: {}]   ;;  %s508_s3 = inlined_call_operand.vmem [shape: bf16[128,128], index: 3, kind: input, shape index: {}]   ;;  %s509_s4 = inlined_call_operand.vmem [shape: f32[1,128], index: 4, kind: input, shape index: {}]   ;;  %s510_s5 = inlined_call_operand.vmem [shape: bf16[128,64], index: 5, kind: input, shape index: {}]   ;;  %s511_s6 = inlined_call_operand.vmem [shape: f32[1,64], index: 6, kind: input, shape index: {}]   ;;  %s512_s7 = inlined_call_operand.hbm [shape: f32[2,64], index: 7, kind: output, shape index: {}]  }
   0x1   :  { %v344_v0 = vld [vmem:[%s506_s1 + $0x8] sm:$0xff]  ;;  %v343_v1 = vld [vmem:[%s506_s1] sm:$0xff] }
   0x2   :  { %60 = vmatpush.bf16.msra.mxu0 %v344_v0  ;;  %v28_v2 = vld [vmem:[%s505_s0] sm:$0x3] }
   0x3   :  { %12 = vsyncpa [#allocation3], 0  ;;  %v29_v3 = vpack.c.bf16 %v28_v2, %v28_v2  ;;  %vm50_vm0 = vcmask 261120   ;;  %v352_v4 = vld [vmem:[%s508_s3 + $0x38] sm:$0xff]  ;;  %v351_v5 = vld [vmem:[%s508_s3 + $0x30] sm:$0xff]  ;;  %s395_s16 = smov [#allocation2]  }
   0x4   :  { %156 = vmatpush.bf16.msra.mxu1 %v352_v4  ;;  %v350_v6 = vld [vmem:[%s508_s3 + $0x28] sm:$0xff]  ;;  %v349_v7 = vld [vmem:[%s508_s3 + $0x20] sm:$0xff]  ;;  %v348_v8 = vld [vmem:[%s508_s3 + $0x18] sm:$0xff]  ;;  %s258_s17 = sshll.u32 %s395_s16, 4  ;;  %vm251_vm5 = vcmask 517120   ;;  %s259_s17 = int_to_ptr.vmem [resolvable:$true] %s258_s17 }
   0x5   :  { %v347_v9 = vld [vmem:[%s508_s3 + $0x10] sm:$0xff]  ;;  %v346_v10 = vld [vmem:[%s508_s3 + $0x8] sm:$0xff]  ;;  %v345_v11 = vld [vmem:[%s508_s3] sm:$0xff] }
   0x6   :  { %61 = vmatpush.bf16.msra.mxu0 %v343_v1  ;;  %v362_v12 = vld [vmem:[%s507_s2] ss:$0 sm:$0xff]  ;;  %v360_v16 = vld [vmem:[%s510_s5 + $0x38] sm:$0xff]  ;;  %v359_v17 = vld [vmem:[%s510_s5 + $0x30] sm:$0xff] }
   0x7   :  { %238 = vmatpush.bf16.msra.mxu2 %v360_v16  ;;  %v358_v19 = vld [vmem:[%s510_s5 + $0x28] sm:$0xff]  ;;  %v357_v22 = vld [vmem:[%s510_s5 + $0x20] sm:$0xff]  ;;  %v356_v23 = vld [vmem:[%s510_s5 + $0x18] sm:$0xff] }
   0x8   :  { %157 = vmatpush.bf16.msra.mxu1 %v351_v5  ;;  %v355_v26 = vld [vmem:[%s510_s5 + $0x10] sm:$0xff]  ;;  %v354_v31 = vld [vmem:[%s510_s5 + $0x8] sm:$0xff]  ;;  %v353_v38 = vld [vmem:[%s510_s5] sm:$0xff]  ;;  %s260_s5 = sshll.u32 %s512_s7, 4  ;;  %s261_s5 = int_to_ptr.hbm [resolvable:$true] %s260_s5 }
   0x9   :  { %277 = vmatmul.msk.bf16.vlgmr.msra.gmra.mxu0 %vm50_vm0, %v29_v3  ;;  %v363_v39 = vld [vmem:[%s509_s4] ss:$0 sm:$0xff] }
   0xa   :  { %v364_v44 = vld [vmem:[%s511_s6] ss:$0 sm:$0xff] }
   0xb   :  { %239 = vmatpush.bf16.msra.mxu2 %v359_v17 }
   0xc   :  { %158 = vmatpush.bf16.msra.mxu1 %v350_v6 }
   0xf   :  { %240 = vmatpush.bf16.msra.mxu2 %v358_v19 }
  0x10   :  { %159 = vmatpush.bf16.msra.mxu1 %v349_v7 }
  0x13   :  { %241 = vmatpush.bf16.msra.mxu2 %v357_v22 }
  0x14   :  { %160 = vmatpush.bf16.msra.mxu1 %v348_v8 }
  0x17   :  { %242 = vmatpush.bf16.msra.mxu2 %v356_v23 }
  0x18   :  { %161 = vmatpush.bf16.msra.mxu1 %v347_v9 }
  0x1b   :  { %243 = vmatpush.bf16.msra.mxu2 %v355_v26 }
  0x1c   :  { %162 = vmatpush.bf16.msra.mxu1 %v346_v10 }
  0x1f   :  { %244 = vmatpush.bf16.msra.mxu2 %v354_v31 }
  0x20   :  { %163 = vmatpush.bf16.msra.mxu1 %v345_v11 }
  0x23   :  { %245 = vmatpush.bf16.msra.mxu2 %v353_v38 }
  0x86   :  { %v63_v13 = vpop.f32.mrf.mxu0 }
  0x87   :  { %v64_v14 = vadd.f32 %v362_v12, %v63_v13 }
  0x89   :  { %v278_v15 = vmul.f32 -1.442695, %v64_v14 }
  0x8b   :  { %365 = vpow2.f32 %v278_v15 }
  0x8e   :  { %v65_v18 = vpop.f32.mrf.mxu0 }
  0x91   :  { %v366_v20 = vpop.eup %365 }
  0x92   :  { %v70_v21 = vadd.f32 1.0, %v366_v20 }
  0x94   :  { %367 = vrcp.f32 %v70_v21  ;;  %v82_v28 = vand.u32 2147483648, %v70_v21  ;;  %v80_v30 = vand.u32 2147483647, %v70_v21  ;;  %vm76_vm2 = vweird.f32 %v70_v21 }
  0x96   :  { %v83_v33 = vor.u32 1.1754944e-38, %v82_v28  ;;  %vm81_vm4 = vcmp.eq.f32.partialorder %v80_v30, 8.507059e+37 }
  0x9a   :  { %v368_v24 = vpop.eup %367 }
  0x9b   :  { %v72_v25 = vmul.f32 %v368_v24, %v70_v21  ;;  %vm77_vm1 = vweird.f32 %v368_v24 }
  0x9c   :  { %vm78_vm3 = vmor %vm76_vm2, %vm77_vm1 }
  0x9d   :  { %v73_v27 = vsub.f32 1.0, %v72_v25 }
  0x9f   :  { %v74_v29 = vmul.f32 %v368_v24, %v73_v27 }
  0xa1   :  { %v75_v32 = vadd.f32 %v368_v24, %v74_v29 }
  0xa3   :  { %v79_v34 = vsel %vm78_vm3, %v368_v24, %v75_v32 }
  0xa4   :  { %v84_v35 = vsel %vm81_vm4, %v83_v33, %v79_v34 }
  0xa5   :  { %v86_v36 = vmul.f32 %v84_v35, %v64_v14 }
  0xa7   :  { %v87_v37 = vpack.c.bf16 %v86_v36, %v86_v36 }
  0xa9   :  { %164 = vmatmul.bf16.vlgmr.msra.gmra.mxu1 %v87_v37 }
 0x126   :  { %v165_v40 = vpop.f32.mrf.mxu1 }
 0x127   :  { %v166_v41 = vadd.f32 %v363_v39, %v165_v40 }
 0x129   :  { %v169_v42 = vpack.c.bf16 %v166_v41, %v166_v41 }
 0x12b   :  { %246 = vmatmul.bf16.vlgmr.msra.gmra.mxu2 %v169_v42 }
 0x12e   :  { %v167_v43 = vpop.f32.mrf.mxu1 }
 0x1ae   :  { %v247_v45 = vpop.f32.mrf.mxu2 }
 0x1af   :  { %v248_v46 = vadd.f32 %v364_v44, %v247_v45 }
 0x1b1   :  { %252 = vst.msk [vmem:[#allocation2] sm:$0x3] %vm251_vm5, %v248_v46 }
 0x1b2   :  { %263 = dma.vmem_to_hbm [thread:$0]  %s259_s17, 32, %s261_s5, [#allocation3]  }
 0x1b6   :  { %v249_v47 = vpop.f32.mrf.mxu2 }
 0x1b7   :  { %393 = dma.done.wait [#allocation3], 32  }
 0x1b8   :  { %394 = vsyncadd [#allocation3], 4294967264 }
 0x1b9   :  { %268 = vsyncpa [#allocation3], 1 }

</bundles_post_ra>
